<compile_context>
chip_gen: v7x
topology: tpu7x:2x2x1
jax: 0.10.0
libtpu: 0.0.40
codegen_flags: <defaults>
</compile_context>

<pallas_src>
import functools

import jax
import jax.numpy as jnp
from jax.experimental import pallas as pl
from jax.experimental.pallas import tpu as pltpu

EPS = 1e-12   # matches the PyTorch module; kept for documentation (no-op in float32)
LANES = 128


def _round_up(x, m):
    return (x + m - 1) // m * m


def bottleneck_kernel(x_ref, w_ref, b_ref, noise_ref, z_ref, kld_ref, *, out_p):
    x = x_ref[...]                                                    # (TB, In)

    # Single fused MXU matmul, f32 accumulation: (TB, In) @ (In, 2P) + (1, 2P).
    y = jnp.dot(x, w_ref[...], preferred_element_type=jnp.float32) + b_ref[...]
    mean = y[:, :out_p]                                               # (TB, P)  mean head
    var = y[:, out_p:]                                                # (TB, P)  var head

    # One exp on the EUP; exp(0.5*var) == sqrt(exp(var)) (EPS=1e-12 is sub-ULP in f32).
    e = jnp.exp(var)
    std = jnp.sqrt(e)

    # KLd = -0.5 * sum(1 + var - mean^2 - exp(var), dim=1).
    # Zero-padded columns contribute 1 + 0 - 0 - exp(0) = 0, so summing the full slab is exact.
    kld_ref[...] = -0.5 * jnp.sum(1.0 + var - mean * mean - e, axis=1, keepdims=True)

    # Reparameterization: z = mean + epsilon * exp(0.5*var).  Padded lanes give 0 + 0*1 = 0.
    z_ref[...] = mean + noise_ref[...] * std


def bottleneck_forward(x, w_mean, b_mean, w_var, b_var, noise, *, batch_tile=256):
    """x: (B, In); w_*: (In, Out); b_*: (1, Out) or (Out,); noise: (B, Out) ~ N(0, 1)."""
    batch, in_features = x.shape
    out_features = w_mean.shape[1]
    out_p = _round_up(out_features, LANES)            # lane-dense per-head width

    x = x.astype(jnp.float32)
    b_mean = jnp.reshape(b_mean, (1, out_features)).astype(jnp.float32)
    b_var = jnp.reshape(b_var, (1, out_features)).astype(jnp.float32)

    # Fused, zero-padded weight/bias slab: (In, 2P) and (1, 2P).
    w_fused = jnp.zeros((in_features, 2 * out_p), jnp.float32)
    w_fused = w_fused.at[:, :out_features].set(w_mean.astype(jnp.float32))
    w_fused = w_fused.at[:, out_p:out_p + out_features].set(w_var.astype(jnp.float32))
    b_fused = jnp.zeros((1, 2 * out_p), jnp.float32)
    b_fused = b_fused.at[:, :out_features].set(b_mean)
    b_fused = b_fused.at[:, out_p:out_p + out_features].set(b_var)

    # Lane-dense noise (zero-padded feature columns -> padded z columns come out 0).
    noise_p = jnp.zeros((batch, out_p), jnp.float32).at[:, :out_features].set(
        noise.astype(jnp.float32))

    # Batch tiling: parallel grid axis (2 TCs on v7x; pipelined HBM loads on v5e/v6e).
    tb = min(batch, batch_tile)
    batch_p = _round_up(batch, tb)
    if batch_p != batch:
        x = jnp.pad(x, ((0, batch_p - batch), (0, 0)))
        noise_p = jnp.pad(noise_p, ((0, batch_p - batch), (0, 0)))
    grid = (batch_p // tb,)

    kernel = functools.partial(bottleneck_kernel, out_p=out_p)

    z_p, kld_p = pl.pallas_call(
        kernel,
        out_shape=(
            jax.ShapeDtypeStruct((batch_p, out_p), jnp.float32),
            jax.ShapeDtypeStruct((batch_p, 1), jnp.float32),
        ),
        grid_spec=pltpu.PrefetchScalarGridSpec(
            num_scalar_prefetch=0,
            grid=grid,
            in_specs=[
                pl.BlockSpec((tb, in_features), lambda i: (i, 0)),          # x tile
                pl.BlockSpec((in_features, 2 * out_p), lambda i: (0, 0)),   # resident fused W
                pl.BlockSpec((1, 2 * out_p), lambda i: (0, 0)),             # resident fused b
                pl.BlockSpec((tb, out_p), lambda i: (i, 0)),                # noise tile
            ],
            out_specs=(
                pl.BlockSpec((tb, out_p), lambda i: (i, 0)),                # z tile (lane-dense)
                pl.BlockSpec((tb, 1), lambda i: (i, 0)),                    # KLd tile
            ),
        ),
        compiler_params=pltpu.CompilerParams(
            dimension_semantics=("parallel",),
        ),
        cost_estimate=pl.CostEstimate(
            flops=2 * batch_p * in_features * 2 * out_p,
            transcendentals=2 * batch_p * out_p,                # exp + sqrt
            bytes_accessed=4 * (batch_p * in_features           # x
                                + in_features * 2 * out_p       # fused weights
                                + 2 * out_p                     # fused bias
                                + 2 * batch_p * out_p           # noise + z
                                + batch_p),                     # KLd
        ),
    )(x, w_fused, b_fused, noise_p)

    # Strip batch/feature padding.
    z = z_p[:batch, :out_features]
    kld = kld_p[:batch, 0]
    return z, kld


def make_params(key, in_features, out_features):
    """Deterministic nn.Linear-style init (uniform in [-1/sqrt(in), 1/sqrt(in)])."""
    k1, k2, k3, k4 = jax.random.split(key, 4)
    bound = 1.0 / jnp.sqrt(in_features)
    # PyTorch stores weight as (out, in); we keep it pre-transposed as (in, out).
    w_mean = jax.random.uniform(k1, (in_features, out_features), jnp.float32, -bound, bound)
    b_mean = jax.random.uniform(k2, (1, out_features), jnp.float32, -bound, bound)
    w_var = jax.random.uniform(k3, (in_features, out_features), jnp.float32, -bound, bound)
    b_var = jax.random.uniform(k4, (1, out_features), jnp.float32, -bound, bound)
    return w_mean, b_mean, w_var, b_var


if __name__ == "__main__":
    batch, in_features, out_features = 8, 32, 16

    root = jax.random.PRNGKey(0)
    k_x, k_params, k_noise = jax.random.split(root, 3)

    x = jax.random.normal(k_x, (batch, in_features), dtype=jnp.float32)
    w_mean, b_mean, w_var, b_var = make_params(k_params, in_features, out_features)
    # Gaussian noise for the reparameterization (torch.randn equivalent), generated outside
    # the kernel so results are deterministic and checkable against the reference.
    noise = jax.random.normal(k_noise, (batch, out_features), dtype=jnp.float32)

    z, kld = bottleneck_forward(x, w_mean, b_mean, w_var, b_var, noise)
    jax.block_until_ready((z, kld))

    # Reference in plain JAX using the exact PyTorch formulas (with the module's EPS).
    mean_ref = x @ w_mean + b_mean
    var_ref = x @ w_var + b_var
    kld_ref = -0.5 * jnp.sum(1.0 + var_ref - mean_ref**2 - jnp.exp(var_ref + EPS), axis=1)
    z_ref = mean_ref + noise * jnp.exp(0.5 * var_ref + EPS)

    assert z.shape == (batch, out_features) and kld.shape == (batch,)
    assert jnp.allclose(z, z_ref, atol=1e-5, rtol=1e-5)
    assert jnp.allclose(kld, kld_ref, atol=1e-5, rtol=1e-5)

    print("KERNEL_OK")
</pallas_src>

<mosaic_0001>
module attributes {stable_mosaic.version = 11 : i64} {
  func.func @bottleneck_kernel(%arg0: i32, %arg1: memref<8x32xf32, #tpu.memory_space<vmem>>, %arg2: memref<32x256xf32, #tpu.memory_space<vmem>>, %arg3: memref<1x256xf32, #tpu.memory_space<vmem>>, %arg4: memref<8x128xf32, #tpu.memory_space<vmem>>, %arg5: memref<8x128xf32, #tpu.memory_space<vmem>>, %arg6: memref<8x1xf32, #tpu.memory_space<vmem>>) attributes {dimension_semantics = [#tpu.dimension_semantics<parallel>], iteration_bounds = array<i64: 1>, scalar_prefetch = 0 : i64, scratch_operands = 0 : i64, tpu.core_type = #tpu.core_type<tc>, window_params = [{transform_indices = @transform_0, window_bounds = array<i64: 8, 32>}, {pipeline_mode = #tpu.pipeline_mode<synchronous>, transform_indices = @transform_1, window_bounds = array<i64: 32, 256>}, {pipeline_mode = #tpu.pipeline_mode<synchronous>, transform_indices = @transform_2, window_bounds = array<i64: 1, 256>}, {transform_indices = @transform_3, window_bounds = array<i64: 8, 128>}, {transform_indices = @transform_4, window_bounds = array<i64: 8, 128>}, {transform_indices = @transform_5, window_bounds = array<i64: 8, 1>}]} {
    %c0 = arith.constant 0 : index
    %c0_0 = arith.constant 0 : index
    %0 = vector.load %arg1[%c0, %c0_0] : memref<8x32xf32, #tpu.memory_space<vmem>>, vector<8x32xf32>
    %c0_1 = arith.constant 0 : index
    %c0_2 = arith.constant 0 : index
    %1 = vector.load %arg2[%c0_1, %c0_2] : memref<32x256xf32, #tpu.memory_space<vmem>>, vector<32x256xf32>
    %cst = arith.constant dense<0.000000e+00> : vector<8x256xf32>
    %2 = tpu.matmul %0, %1, %cst {dimension_numbers = #tpu.dot_dimension_numbers<[1], [0], [0], [1], [0, 0, 1, 1], [], []>} : vector<8x32xf32>, vector<32x256xf32>, vector<8x256xf32> -> vector<8x256xf32>
    %c0_3 = arith.constant 0 : index
    %c0_4 = arith.constant 0 : index
    %3 = vector.load %arg3[%c0_3, %c0_4] : memref<1x256xf32, #tpu.memory_space<vmem>>, vector<1x256xf32>
    %4 = vector.broadcast %3 : vector<1x256xf32> to vector<8x256xf32>
    %5 = arith.addf %2, %4 : vector<8x256xf32>
    %6 = vector.extract_strided_slice %5 {offsets = [0, 0], sizes = [8, 128], strides = [1, 1]} : vector<8x256xf32> to vector<8x128xf32>
    %7 = vector.extract_strided_slice %5 {offsets = [0, 128], sizes = [8, 128], strides = [1, 1]} : vector<8x256xf32> to vector<8x128xf32>
    %8 = math.exp %7 : vector<8x128xf32>
    %9 = math.sqrt %8 : vector<8x128xf32>
    %cst_5 = arith.constant 1.000000e+00 : f32
    %10 = vector.broadcast %cst_5 : f32 to vector<8x128xf32>
    %11 = arith.addf %10, %7 : vector<8x128xf32>
    %12 = arith.mulf %6, %6 : vector<8x128xf32>
    %13 = arith.subf %11, %12 : vector<8x128xf32>
    %14 = arith.subf %13, %8 : vector<8x128xf32>
    %cst_6 = arith.constant dense<0.000000e+00> : vector<8xf32>
    %15 = vector.multi_reduction <add>, %14, %cst_6 [1] : vector<8x128xf32> to vector<8xf32>
    %16 = vector.shape_cast %15 : vector<8xf32> to vector<8x1xf32>
    %cst_7 = arith.constant -5.000000e-01 : f32
    %17 = vector.broadcast %cst_7 : f32 to vector<8x1xf32>
    %18 = arith.mulf %17, %16 : vector<8x1xf32>
    %c0_8 = arith.constant 0 : index
    %c0_9 = arith.constant 0 : index
    %19 = vector.load %arg6[%c0_8, %c0_9] : memref<8x1xf32, #tpu.memory_space<vmem>>, vector<8x1xf32>
    tpu.vector_store %arg6[%c0_8, %c0_9], %18 {strides = array<i32>} : memref<8x1xf32, #tpu.memory_space<vmem>>, vector<8x1xf32>,
    %c0_10 = arith.constant 0 : index
    %c0_11 = arith.constant 0 : index
    %20 = vector.load %arg4[%c0_10, %c0_11] : memref<8x128xf32, #tpu.memory_space<vmem>>, vector<8x128xf32>
    %21 = arith.mulf %20, %9 : vector<8x128xf32>
    %22 = arith.addf %6, %21 : vector<8x128xf32>
    %c0_12 = arith.constant 0 : index
    %c0_13 = arith.constant 0 : index
    %23 = vector.load %arg5[%c0_12, %c0_13] : memref<8x128xf32, #tpu.memory_space<vmem>>, vector<8x128xf32>
    tpu.vector_store %arg5[%c0_12, %c0_13], %22 {strides = array<i32>} : memref<8x128xf32, #tpu.memory_space<vmem>>, vector<8x128xf32>,
    return
  }
  func.func @transform_0(%arg0: i32) -> (i32, i32) {
    %c0_i32 = arith.constant 0 : i32
    %c0_i32_0 = arith.constant 0 : i32
    return %arg0, %c0_i32 : i32, i32
  }
  func.func @transform_1(%arg0: i32) -> (i32, i32) {
    %c0_i32 = arith.constant 0 : i32
    %c0_i32_0 = arith.constant 0 : i32
    %c0_i32_1 = arith.constant 0 : i32
    return %c0_i32, %c0_i32_0 : i32, i32
  }
  func.func @transform_2(%arg0: i32) -> (i32, i32) {
    %c0_i32 = arith.constant 0 : i32
    %c0_i32_0 = arith.constant 0 : i32
    %c0_i32_1 = arith.constant 0 : i32
    return %c0_i32, %c0_i32_0 : i32, i32
  }
  func.func @transform_3(%arg0: i32) -> (i32, i32) {
    %c0_i32 = arith.constant 0 : i32
    %c0_i32_0 = arith.constant 0 : i32
    return %arg0, %c0_i32 : i32, i32
  }
  func.func @transform_4(%arg0: i32) -> (i32, i32) {
    %c0_i32 = arith.constant 0 : i32
    %c0_i32_0 = arith.constant 0 : i32
    return %arg0, %c0_i32 : i32, i32
  }
  func.func @transform_5(%arg0: i32) -> (i32, i32) {
    %c0_i32 = arith.constant 0 : i32
    %c0_i32_0 = arith.constant 0 : i32
    return %arg0, %c0_i32 : i32, i32
  }
}

</mosaic_0001>

<bundles_post_ra>
// kernel: tpu_custom_call.1
= control target key start
LH: loop header
LB: loop body
LE: loop exit
PB: predicated region body
PF: predicated region fallthrough
CT: control target
= control target key end

     0   :  { %11 = vsyncpa [#allocation3], 0  ;;  %s363_s0 = inlined_call_operand.hbm [shape: f32[8,32], index: 0, kind: input, shape index: {}]   ;;  %s364_s1 = inlined_call_operand.hbm [shape: f32[32,256], index: 1, kind: input, shape index: {}]   ;;  %s365_s2 = inlined_call_operand.vmem [shape: f32[1,256], index: 2, kind: input, shape index: {}]   ;;  %s366_s3 = inlined_call_operand.vmem [shape: f32[8,128], index: 3, kind: input, shape index: {}]   ;;  %s367_s4 = inlined_call_operand.hbm [shape: f32[8,128], index: 4, kind: output, shape index: {0}]   ;;  %s368_s5 = inlined_call_operand.vmem [shape: f32[8,1], index: 5, kind: output, shape index: {1}]  }
   0x1   :  { %12 = vsyncpa [#allocation6], 0 }
   0x2   :  { %13 = vsyncpa [#allocation4], 0  ;;  %s275_s18 = smov [#allocation2]   ;;  %s276_s20 = smov [#allocation5]  }
   0x3   :  { %s20_s19 = sshll.u32 %s275_s18, 4  ;;  %s29_s21 = sshll.u32 %s276_s20, 4  ;;  %s21_s19 = int_to_ptr.vmem [resolvable:$true] %s20_s19  ;;  %s311_s21 = int_to_ptr.vmem [resolvable:$true] %s29_s21 }
   0x4   :  { %s203_s24 = scalar_lea.hbm %s363_s0, 128 }
   0x5   :  { %p204_p0 = scmp.ne.s32.totalorder %s363_s0, %s203_s24  ;;  %p207_p1 = scmp.lt.u32.totalorder %s203_s24, %s363_s0 }
   0x7   :  { %p209_p2 = pnand %p207_p1, %p204_p0 }
   0x9   :  { %212 = shalt.err (!%p209_p2)
}
   0xa   :  { %s213_s29 = scalar_lea.vmem %s21_s19, 128  ;;  %p218_p4 = scmp.lt.s32.totalorder %s21_s19, %s21_s19 }
   0xb   :  { %p214_p3 = scmp.ne.s32.totalorder %s21_s19, %s213_s29  ;;  %p219_p5 = scmp.lt.s32.totalorder %s213_s29, %s213_s29 }
   0xd   :  { %p220_p6 = por %p219_p5, %p218_p4 }
   0xf   :  { %p221_p7 = pnand %p220_p6, %p214_p3 }
  0x11   :  { %224 = shalt.err (!%p221_p7)
}
  0x12   :  { %23 = dma.hbm_to_vmem [thread:$0]  %s363_s0, 128, %s21_s19, [#allocation3]  }
  0x13   :  { %s225_s9 = scalar_lea.hbm %s364_s1, 1024 }
  0x14   :  { %p226_p8 = scmp.ne.s32.totalorder %s364_s1, %s225_s9  ;;  %p229_p9 = scmp.lt.u32.totalorder %s225_s9, %s364_s1 }
  0x16   :  { %p231_p10 = pnand %p229_p9, %p226_p8 }
  0x18   :  { %234 = shalt.err (!%p231_p10)
}
  0x19   :  { %s235_s14 = scalar_lea.vmem %s311_s21, 1024  ;;  %p240_p12 = scmp.lt.s32.totalorder %s311_s21, %s311_s21 }
  0x1a   :  { %p236_p11 = scmp.ne.s32.totalorder %s311_s21, %s235_s14  ;;  %p241_p13 = scmp.lt.s32.totalorder %s235_s14, %s235_s14 }
  0x1c   :  { %p242_p0 = por %p241_p13, %p240_p12 }
  0x1e   :  { %p243_p1 = pnand %p242_p0, %p236_p11 }
  0x20   :  { %246 = shalt.err (!%p243_p1)
}
  0x21   :  { %s277_s0 = smov 256   ;;  %s278_s15 = smov 16  }
  0x22   :  { %35 = dma.hbm_to_vmem [thread:$0]  %s364_s1, 1024, %s311_s21, [#allocation6], %s277_s0, %s277_s0, %s278_s15  }
  0x23   :  { %269 = dma.done.wait [#allocation3], 128  }
  0x24   :  { %270 = vsyncadd [#allocation3], 4294967168 }
  0x25   :  { %271 = dma.done.wait [#allocation6], 1024  }
  0x26   :  { %272 = vsyncadd [#allocation6], 4294966272  ;;  %v279_v0 = vmov 0.0   ;;  %v48_v1 = vld [vmem:[#allocation5 + $0x8] sm:$0xff]  ;;  %v50_v2 = vld [vmem:[#allocation5 + $0x18] sm:$0xff]  ;;  %vm67_vm0 = vcmask 261120   ;;  %v57_v14 = vlaneseq }
  0x27   :  { %135 = vmatprep.mubr.f32.mxu0 %v279_v0  ;;  %v47_v3 = vld [vmem:[#allocation5] sm:$0xff]  ;;  %v185_v4 = vpack.c.bf16 %v50_v2, %v48_v1  ;;  %v49_v5 = vld [vmem:[#allocation5 + $0x10] sm:$0xff]  ;;  %v52_v6 = vld [vmem:[#allocation5 + $0x28] sm:$0xff]  ;;  %s280_s20 = smov [#allocation7]  }
  0x28   :  { %v54_v7 = vld [vmem:[#allocation5 + $0x38] sm:$0xff]  ;;  %v187_v8 = vpack.c.bf16 %v49_v5, %v47_v3  ;;  %v51_v10 = vld [vmem:[#allocation5 + $0x20] sm:$0xff]  ;;  %v53_v11 = vld [vmem:[#allocation5 + $0x30] sm:$0xff]  ;;  %v58_v15 = vshrl.u32 %v57_v14, 7  ;;  %s170_s21 = sshll.u32 %s280_s20, 4  ;;  %s171_s21 = int_to_ptr.vmem [resolvable:$true] %s170_s21 }
  0x29   :  { %v189_v9 = vpack.c.bf16 %v54_v7, %v52_v6  ;;  %186 = vmatprep.subr.bf16.mxu0 %v185_v4  ;;  %v191_v12 = vpack.c.bf16 %v53_v11, %v51_v10  ;;  %v46_v13 = vld [vmem:[#allocation2] sm:$0xff]  ;;  %s247_s22 = scalar_lea.vmem %s171_s21, 128  ;;  %p252_p3 = scmp.lt.s32.totalorder %s171_s21, %s171_s21 }
  0x2a   :  { %188 = vmatpush1.bf16.msra.mxu0 %v187_v8  ;;  %v59_v16 = vsub.s32 0, %v58_v15  ;;  %v55_v17 = vld [vmem:[%s365_s2] sm:$0x3]  ;;  %v63_v18 = vsub.s32 1, %v58_v15  ;;  %p248_p2 = scmp.ne.s32.totalorder %s171_s21, %s247_s22  ;;  %p253_p4 = scmp.lt.s32.totalorder %s247_s22, %s247_s22 }
  0x2b   :  { %190 = vmatprep.subr.bf16.mxu0 %v189_v9  ;;  %v160_v34 = vld [vmem:[%s366_s3] sm:$0xff] }
  0x2c   :  { %v60_v19 = vrot.slane %v55_v17, %v59_v16  ;;  %v64_v20 = vrot.slane %v55_v17, %v63_v18  ;;  %p254_p5 = por %p253_p4, %p252_p3 }
  0x2e   :  { %192 = vmatpush1.bf16.msra.mxu0 %v191_v12  ;;  %p255_p6 = pnand %p254_p5, %p248_p2 }
  0x31   :  { %184 = vmatmul.mubr.msk.f32.vlgmr.msra.gmra.mrb[0].mxu0 %vm67_vm0, %v46_v13 }
 0x104   :  { %v137_v21 = vpop.f32.mrb[0].mxu0 }
 0x105   :  { %v138_v22 = vadd.f32 %v137_v21, %v60_v19  ;;  %v139_v23 = vpop.f32.mrb[1].mxu0 }
 0x106   :  { %v140_v24 = vadd.f32 %v139_v23, %v64_v20 }
 0x107   :  { %v152_v25 = vmul.f32 %v138_v22, %v138_v22 }
 0x108   :  { %v142_v26 = vmul.f32 1.442695, %v140_v24  ;;  %v151_v27 = vadd.f32 1.0, %v140_v24 }
 0x10a   :  { %199 = vpow2.f32 %v142_v26  ;;  %v153_v28 = vsub.f32 %v151_v27, %v152_v25 }
 0x114   :  { %v200_v29 = vpop.eup %199 }
 0x115   :  { %v154_v30 = vsub.f32 %v153_v28, %v200_v29  ;;  %201 = vrsqrt.f32 %v200_v29  ;;  %vm146_vm1 = vcmp.eq.f32.partialorder %v200_v29, inf  ;;  %v149_v33 = vand.u32 2147483648, %v200_v29 }
 0x116   :  { %vm148_vm2 = vcmp.eq.f32.partialorder %v200_v29, 0.0 }
 0x117   :  { %155 = vadd.xlane.f32.xlu0 %v154_v30 }
 0x11f   :  { %v202_v31 = vpop.eup %201 }
 0x120   :  { %v145_v32 = vmul.f32 %v202_v31, %v200_v29 }
 0x122   :  { %v147_v35 = vsel %vm146_vm1, %v200_v29, %v145_v32 }
 0x123   :  { %v150_v36 = vsel %vm148_vm2, %v149_v33, %v147_v35 }
 0x124   :  { %v161_v37 = vmul.f32 %v160_v34, %v150_v36 }
 0x126   :  { %v162_v38 = vadd.f32 %v161_v37, %v138_v22 }
 0x128   :  { %163 = vst [vmem:[#allocation7] sm:$0xff] %v162_v38 }
 0x129   :  { %258 = shalt.err (!%p255_p6)
}
 0x12a   :  { %s259_s3 = scalar_lea.hbm %s367_s4, 128 }
 0x12b   :  { %p260_p7 = scmp.ne.s32.totalorder %s367_s4, %s259_s3  ;;  %p263_p8 = scmp.lt.u32.totalorder %s259_s3, %s367_s4 }
 0x12d   :  { %p265_p9 = pnand %p263_p8, %p260_p7 }
 0x12f   :  { %268 = shalt.err (!%p265_p9)
}
 0x130   :  { %173 = dma.vmem_to_hbm [thread:$0]  %s171_s21, 128, %s367_s4, [#allocation4]   ;;  %vm158_vm3 = vcmask 7168  }
 0x1a4   :  { %v156_v39 = vpop.xlane.xlu0 %155 }
 0x1a5   :  { %v157_v40 = vmul.f32 -0.5, %v156_v39 }
 0x1a7   :  { %159 = vst.msk [vmem:[%s368_s5] sm:$0xff] %vm158_vm3, %v157_v40 }
 0x1a8   :  { %273 = dma.done.wait [#allocation4], 128  }
 0x1a9   :  { %274 = vsyncadd [#allocation4], 4294967168 }
 0x1aa   :  { %181 = vsyncpa [#allocation3], 1 }
 0x1ab   :  { %182 = vsyncpa [#allocation6], 1 }
 0x1ac   :  { %183 = vsyncpa [#allocation4], 1 }

</bundles_post_ra>
